<compile_context>
chip_gen: v6e
topology: v6e:2x2x1
jax: 0.10.0
libtpu: 0.0.40
codegen_flags: <defaults>
</compile_context>

<pallas_src>
import functools

import jax
import jax.numpy as jnp
from jax.experimental import pallas as pl
from jax.experimental.pallas import tpu as pltpu

BN_EPS = 1e-5
_LANE = 128
_MAX_TILE_N = 2048


def _vmem_capacity_bytes():
    try:
        info = pltpu.get_tpu_info()
        cap = getattr(info, "vmem_capacity_bytes", None)
        if cap:
            return int(cap)
    except Exception:
        pass
    return 64 * 1024 * 1024  # conservative (v7x-sized) fallback


# --------------------------------------------------------------------------
# Tiled pass 1: per-tile BatchNorm partial statistics (parallel over tiles)
# --------------------------------------------------------------------------
def _bn_partial_stats_kernel(x_ref, mean_ref, m2_ref, *, n_rows, tile_n):
    """grid = (num_tiles,), all-"parallel". Emits per-tile (mean, M2)."""
    i = pl.program_id(0)
    x = x_ref[...].astype(jnp.float32)                       # (tile_n, D)

    # Only the last tile may be partial; its out-of-bounds rows hold junk and
    # are removed with a NaN-safe select (not a multiply mask).
    remaining = n_rows - i * tile_n
    row = jax.lax.broadcasted_iota(jnp.int32, (tile_n, 1), 0)
    valid = row < remaining                                  # (tile_n, 1)
    nb = jnp.minimum(remaining, tile_n).astype(jnp.float32)

    xm = jnp.where(valid, x, 0.0)
    mb = jnp.sum(xm, axis=0, keepdims=True) / nb             # (1, D) tile mean
    d = jnp.where(valid, x - mb, 0.0)
    m2b = jnp.sum(d * d, axis=0, keepdims=True)              # (1, D) tile M2

    mean_ref[...] = mb.reshape(1, 1, -1)
    m2_ref[...] = m2b.reshape(1, 1, -1)


# --------------------------------------------------------------------------
# Tiled pass 2: fused (BN-folded) fc1 + ReLU + fc2(+bias) + sigmoid
# --------------------------------------------------------------------------
def _mlp_kernel(x_ref, w1f_ref, b1f_ref, w2_ref, o_ref):
    x = x_ref[...].astype(jnp.float32)                       # (tile_n, D)
    h = jnp.dot(x, w1f_ref[...],
                preferred_element_type=jnp.float32) + b1f_ref[...]
    h = jnp.maximum(h, 0.0)                                  # (tile_n, Hp)
    # fc2 (bias already folded into w2 via the constant-1 hidden column):
    #   (1, Hp) . (tile_n, Hp)^T -> (1, tile_n)   lane-dense output row.
    y = jax.lax.dot_general(w2_ref[...], h, (((1,), (1,)), ((), ())),
                            preferred_element_type=jnp.float32)
    # sigmoid: exp on the EUP, approximate reciprocal on the EUP
    o_ref[...] = pl.reciprocal(1.0 + jnp.exp(-y), approx=True)


# --------------------------------------------------------------------------
# Fast path: whole batch resident in VMEM -> one kernel, one HBM read of x
# --------------------------------------------------------------------------
def _fused_small_kernel(x_ref, gamma_ref, beta_ref, w1_ref, b1_ref, w2_ref,
                        o_ref, *, n_rows):
    x = x_ref[...].astype(jnp.float32)                       # (N, D)
    inv_n = 1.0 / n_rows
    mean = jnp.sum(x, axis=0, keepdims=True) * inv_n         # (1, D)
    d = x - mean
    var = jnp.sum(d * d, axis=0, keepdims=True) * inv_n      # biased (training)
    scale = gamma_ref[...] * jax.lax.rsqrt(var + BN_EPS)
    xn = d * scale + beta_ref[...]                           # (N, D)
    h = jnp.maximum(jnp.dot(xn, w1_ref[...],
                            preferred_element_type=jnp.float32) + b1_ref[...],
                    0.0)                                     # (N, Hp)
    y = jax.lax.dot_general(w2_ref[...], h, (((1,), (1,)), ((), ())),
                            preferred_element_type=jnp.float32)  # (1, N)
    o_ref[...] = pl.reciprocal(1.0 + jnp.exp(-y), approx=True)


# --------------------------------------------------------------------------
# Wrapper
# --------------------------------------------------------------------------
def nn_forward(x, params, *, allow_fast_path=True, max_tile_n=None):
    """x: (N, D) float32. Returns (N,) float32 (matches torch .view(-1))."""
    gamma, beta, w1, b1, w2, b2 = params
    N, D = x.shape
    H = w1.shape[1]
    # Hidden padded to a lane-friendly size with at least one spare column,
    # used to fold the fc2 bias (b1[H] = 1, w2[H] = b2).
    Hp = ((H + 1 + 63) // 64) * 64

    x = x.astype(jnp.float32)

    gamma_r = gamma.reshape(1, D).astype(jnp.float32)
    beta_r = beta.reshape(1, D).astype(jnp.float32)
    w1_p = jnp.zeros((D, Hp), jnp.float32).at[:, :H].set(w1.astype(jnp.float32))
    b1_p = (jnp.zeros((1, Hp), jnp.float32)
            .at[0, :H].set(b1.astype(jnp.float32))
            .at[0, H].set(1.0))                      # constant-1 hidden column
    w2_row = (jnp.zeros((1, Hp), jnp.float32)
              .at[0, :H].set(w2.reshape(-1).astype(jnp.float32))
              .at[0, H].set(b2.reshape(()).astype(jnp.float32)))  # fc2 bias

    vmem_cap = _vmem_capacity_bytes()
    # 48 MiB on a 64-MiB-VMEM chip (v7x), 96 MiB on 128-MiB chips (v5e/v6e).
    vmem_limit = int(min(vmem_cap * 3 // 4, 96 * 1024 * 1024))

    x_bytes = N * D * 4
    w_bytes = D * Hp * 4

    # ---------------- fast path: whole batch resident in VMEM ----------------
    fast_working = (2 * x_bytes          # x block (double-buffered)
                    + 2 * x_bytes        # centered / normalized intermediates
                    + N * Hp * 4         # hidden activations
                    + 2 * w_bytes + 8 * Hp * 4
                    + 2 * N * 4          # output
                    + (2 << 20))
    if allow_fast_path and fast_working <= max(vmem_limit - (8 << 20), 0):
        y = pl.pallas_call(
            functools.partial(_fused_small_kernel, n_rows=N),
            out_shape=jax.ShapeDtypeStruct((1, N), jnp.float32),
            grid=(1,),
            in_specs=[
                pl.BlockSpec((N, D), lambda i: (0, 0)),
                pl.BlockSpec((1, D), lambda i: (0, 0)),
                pl.BlockSpec((1, D), lambda i: (0, 0)),
                pl.BlockSpec((D, Hp), lambda i: (0, 0)),
                pl.BlockSpec((1, Hp), lambda i: (0, 0)),
                pl.BlockSpec((1, Hp), lambda i: (0, 0)),
            ],
            out_specs=pl.BlockSpec((1, N), lambda i: (0, 0)),
            compiler_params=pltpu.CompilerParams(
                dimension_semantics=("arbitrary",),
                vmem_limit_bytes=vmem_limit),
            cost_estimate=pl.CostEstimate(
                flops=int(2 * N * D * Hp + 10 * N * D),
                transcendentals=int(N + D),
                bytes_accessed=int(x_bytes + w_bytes + 8 * D + 4 * N)),
        )(x, gamma_r, beta_r, w1_p, b1_p, w2_row)
        return y.reshape(-1)

    # ---------------- tiled path ----------------
    # Adaptive batch tile: biggest multiple of 128 (<= 2048) whose working set
    # (x double-buffer + temps + hidden + double-buffered weights) fits the
    # per-generation VMEM budget.
    budget = max(vmem_limit - (6 << 20), 8 << 20)
    per_row = 4 * (4 * D + 2 * Hp)
    tile_cap = max(_LANE, ((budget - 2 * w_bytes) // per_row) // _LANE * _LANE)
    tile_cap = min(tile_cap, _MAX_TILE_N)
    if max_tile_n is not None:
        tile_cap = min(tile_cap, max((int(max_tile_n) // _LANE) * _LANE, _LANE))

    if N <= tile_cap:
        tile_n = N                       # single full-array block
        num_tiles = 1
    else:
        tile_n = tile_cap                # multiple of 128
        num_tiles = -(-N // tile_n)      # ceil; only the last block is partial

    # ---- pass 1: per-tile partial stats (both TensorCores stream x) ----
    mean_parts, m2_parts = pl.pallas_call(
        functools.partial(_bn_partial_stats_kernel, n_rows=N, tile_n=tile_n),
        out_shape=(jax.ShapeDtypeStruct((num_tiles, 1, D), jnp.float32),
                   jax.ShapeDtypeStruct((num_tiles, 1, D), jnp.float32)),
        grid=(num_tiles,),
        in_specs=[pl.BlockSpec((tile_n, D), lambda i: (i, 0))],
        out_specs=(pl.BlockSpec((1, 1, D), lambda i: (i, 0, 0)),
                   pl.BlockSpec((1, 1, D), lambda i: (i, 0, 0))),
        compiler_params=pltpu.CompilerParams(
            dimension_semantics=("parallel",),
            vmem_limit_bytes=vmem_limit),
        cost_estimate=pl.CostEstimate(
            flops=int(6 * N * D), transcendentals=0,
            bytes_accessed=int(x_bytes + 8 * num_tiles * D)),
    )(x)

    # Exact Chan / pooled-variance combine across tiles (tiny XLA op).
    counts = jnp.minimum(
        N - jnp.arange(num_tiles, dtype=jnp.float32) * tile_n,
        float(tile_n)).reshape(num_tiles, 1, 1)
    mean = jnp.sum(counts * mean_parts, axis=0) / N               # (1, D)
    m2 = jnp.sum(m2_parts + counts * (mean_parts - mean) ** 2, axis=0)
    var = m2 / N                                                  # biased var
    scale = gamma_r * jax.lax.rsqrt(var + BN_EPS)
    shift = beta_r - mean * scale

    # Fold the BatchNorm affine into fc1 (tiny (D, Hp) op; removes any (N, D)
    # normalize tensor from the hot kernel). The constant-1 bias column of
    # b1_p is preserved (w1_p[:, H] == 0).
    w1_f = w1_p * scale.reshape(D, 1)
    b1_f = jnp.dot(shift, w1_p) + b1_p

    # ---- pass 2: fused matmul pipeline, lane-dense (1, N) output ----
    y = pl.pallas_call(
        _mlp_kernel,
        out_shape=jax.ShapeDtypeStruct((1, N), jnp.float32),
        grid=(num_tiles,),
        in_specs=[
            pl.BlockSpec((tile_n, D), lambda i: (i, 0)),
            pl.BlockSpec((D, Hp), lambda i: (0, 0)),
            pl.BlockSpec((1, Hp), lambda i: (0, 0)),
            pl.BlockSpec((1, Hp), lambda i: (0, 0)),
        ],
        out_specs=pl.BlockSpec((1, tile_n), lambda i: (0, i)),
        compiler_params=pltpu.CompilerParams(
            dimension_semantics=("parallel",),
            vmem_limit_bytes=vmem_limit),
        cost_estimate=pl.CostEstimate(
            flops=int(2 * N * D * Hp + 4 * N * Hp),
            transcendentals=int(N),
            bytes_accessed=int(x_bytes + w_bytes + 8 * Hp + 4 * N)),
    )(x, w1_f, b1_f, w2_row)

    return y.reshape(-1)


# --------------------------------------------------------------------------
# Params / reference / demo
# --------------------------------------------------------------------------
def init_params(key, input_size, hidden=50):
    k1, k2, k3, k4 = jax.random.split(key, 4)
    gamma = jnp.ones((input_size,), jnp.float32)      # BatchNorm1d defaults
    beta = jnp.zeros((input_size,), jnp.float32)
    bound1 = 1.0 / jnp.sqrt(input_size)
    w1 = jax.random.uniform(k1, (input_size, hidden), jnp.float32, -bound1, bound1)
    b1 = jax.random.uniform(k2, (hidden,), jnp.float32, -bound1, bound1)
    bound2 = 1.0 / jnp.sqrt(hidden)
    w2 = jax.random.uniform(k3, (hidden, 1), jnp.float32, -bound2, bound2)
    b2 = jax.random.uniform(k4, (1,), jnp.float32, -bound2, bound2)
    return (gamma, beta, w1, b1, w2, b2)


def _reference(x, params):
    gamma, beta, w1, b1, w2, b2 = params
    mean = jnp.mean(x, axis=0, keepdims=True)
    var = jnp.mean((x - mean) ** 2, axis=0, keepdims=True)
    xn = (x - mean) * jax.lax.rsqrt(var + BN_EPS) * gamma + beta
    h = jnp.maximum(xn @ w1 + b1, 0.0)
    return jax.nn.sigmoid(h @ w2 + b2).reshape(-1)


if __name__ == "__main__":
    key = jax.random.PRNGKey(0)
    kx, kp, kx2, kp2 = jax.random.split(key, 4)

    # Small shapes -> single-kernel fast path (x resident in VMEM).
    N, D = 8, 32
    x = jax.random.normal(kx, (N, D), jnp.float32)
    params = init_params(kp, D)
    y = nn_forward(x, params)
    jax.block_until_ready(y)
    assert y.shape == (N,)
    y_ref = _reference(x, params)
    assert jnp.allclose(y, y_ref, atol=1e-2, rtol=1e-2), (y, y_ref)

    # Larger batch -> tiled two-pass path with a partial last tile
    # (600 rows at tile_n=256 -> 3 tiles, last tile has 88 valid rows).
    N2, D2 = 600, 160
    x2 = jax.random.normal(kx2, (N2, D2), jnp.float32)
    params2 = init_params(kp2, D2)
    y2 = nn_forward(x2, params2, allow_fast_path=False, max_tile_n=256)
    jax.block_until_ready(y2)
    assert y2.shape == (N2,)
    y2_ref = _reference(x2, params2)
    assert jnp.allclose(y2, y2_ref, atol=1e-2, rtol=1e-2), (y2, y2_ref)

    print("KERNEL_OK")
</pallas_src>

<mosaic_0001>
module attributes {stable_mosaic.version = 11 : i64} {
  func.func @_fused_small_kernel(%arg0: i32, %arg1: memref<8x32xf32, #tpu.memory_space<vmem>>, %arg2: memref<1x32xf32, #tpu.memory_space<vmem>>, %arg3: memref<1x32xf32, #tpu.memory_space<vmem>>, %arg4: memref<32x64xf32, #tpu.memory_space<vmem>>, %arg5: memref<1x64xf32, #tpu.memory_space<vmem>>, %arg6: memref<1x64xf32, #tpu.memory_space<vmem>>, %arg7: memref<1x8xf32, #tpu.memory_space<vmem>>) attributes {dimension_semantics = [#tpu.dimension_semantics<arbitrary>], iteration_bounds = array<i64: 1>, scalar_prefetch = 0 : i64, scratch_operands = 0 : i64, tpu.core_type = #tpu.core_type<tc>, window_params = [{pipeline_mode = #tpu.pipeline_mode<synchronous>, transform_indices = @transform_0, window_bounds = array<i64: 8, 32>}, {pipeline_mode = #tpu.pipeline_mode<synchronous>, transform_indices = @transform_1, window_bounds = array<i64: 1, 32>}, {pipeline_mode = #tpu.pipeline_mode<synchronous>, transform_indices = @transform_2, window_bounds = array<i64: 1, 32>}, {pipeline_mode = #tpu.pipeline_mode<synchronous>, transform_indices = @transform_3, window_bounds = array<i64: 32, 64>}, {pipeline_mode = #tpu.pipeline_mode<synchronous>, transform_indices = @transform_4, window_bounds = array<i64: 1, 64>}, {pipeline_mode = #tpu.pipeline_mode<synchronous>, transform_indices = @transform_5, window_bounds = array<i64: 1, 64>}, {pipeline_mode = #tpu.pipeline_mode<synchronous>, transform_indices = @transform_6, window_bounds = array<i64: 1, 8>}]} {
    %c0 = arith.constant 0 : index
    %c0_0 = arith.constant 0 : index
    %0 = vector.load %arg1[%c0, %c0_0] : memref<8x32xf32, #tpu.memory_space<vmem>>, vector<8x32xf32>
    %cst = arith.constant dense<0.000000e+00> : vector<32xf32>
    %1 = vector.multi_reduction <add>, %0, %cst [0] : vector<8x32xf32> to vector<32xf32>
    %2 = vector.shape_cast %1 : vector<32xf32> to vector<1x32xf32>
    %cst_1 = arith.constant 1.250000e-01 : f32
    %3 = vector.broadcast %cst_1 : f32 to vector<1x32xf32>
    %4 = arith.mulf %2, %3 : vector<1x32xf32>
    %5 = vector.broadcast %4 : vector<1x32xf32> to vector<8x32xf32>
    %6 = arith.subf %0, %5 : vector<8x32xf32>
    %7 = arith.mulf %6, %6 : vector<8x32xf32>
    %cst_2 = arith.constant dense<0.000000e+00> : vector<32xf32>
    %8 = vector.multi_reduction <add>, %7, %cst_2 [0] : vector<8x32xf32> to vector<32xf32>
    %9 = vector.shape_cast %8 : vector<32xf32> to vector<1x32xf32>
    %cst_3 = arith.constant 1.250000e-01 : f32
    %10 = vector.broadcast %cst_3 : f32 to vector<1x32xf32>
    %11 = arith.mulf %9, %10 : vector<1x32xf32>
    %c0_4 = arith.constant 0 : index
    %c0_5 = arith.constant 0 : index
    %12 = vector.load %arg2[%c0_4, %c0_5] : memref<1x32xf32, #tpu.memory_space<vmem>>, vector<1x32xf32>
    %cst_6 = arith.constant 9.99999974E-6 : f32
    %13 = vector.broadcast %cst_6 : f32 to vector<1x32xf32>
    %14 = arith.addf %11, %13 : vector<1x32xf32>
    %15 = math.rsqrt %14 : vector<1x32xf32>
    %16 = arith.mulf %12, %15 : vector<1x32xf32>
    %17 = vector.broadcast %16 : vector<1x32xf32> to vector<8x32xf32>
    %18 = arith.mulf %6, %17 : vector<8x32xf32>
    %c0_7 = arith.constant 0 : index
    %c0_8 = arith.constant 0 : index
    %19 = vector.load %arg3[%c0_7, %c0_8] : memref<1x32xf32, #tpu.memory_space<vmem>>, vector<1x32xf32>
    %20 = vector.broadcast %19 : vector<1x32xf32> to vector<8x32xf32>
    %21 = arith.addf %18, %20 : vector<8x32xf32>
    %c0_9 = arith.constant 0 : index
    %c0_10 = arith.constant 0 : index
    %22 = vector.load %arg4[%c0_9, %c0_10] : memref<32x64xf32, #tpu.memory_space<vmem>>, vector<32x64xf32>
    %cst_11 = arith.constant dense<0.000000e+00> : vector<8x64xf32>
    %23 = tpu.matmul %21, %22, %cst_11 {dimension_numbers = #tpu.dot_dimension_numbers<[1], [0], [0], [1], [0, 0, 1, 1], [], []>} : vector<8x32xf32>, vector<32x64xf32>, vector<8x64xf32> -> vector<8x64xf32>
    %c0_12 = arith.constant 0 : index
    %c0_13 = arith.constant 0 : index
    %24 = vector.load %arg5[%c0_12, %c0_13] : memref<1x64xf32, #tpu.memory_space<vmem>>, vector<1x64xf32>
    %25 = vector.broadcast %24 : vector<1x64xf32> to vector<8x64xf32>
    %26 = arith.addf %23, %25 : vector<8x64xf32>
    %cst_14 = arith.constant 0.000000e+00 : f32
    %27 = vector.broadcast %cst_14 : f32 to vector<8x64xf32>
    %28 = arith.maximumf %26, %27 : vector<8x64xf32>
    %c0_15 = arith.constant 0 : index
    %c0_16 = arith.constant 0 : index
    %29 = vector.load %arg6[%c0_15, %c0_16] : memref<1x64xf32, #tpu.memory_space<vmem>>, vector<1x64xf32>
    %cst_17 = arith.constant dense<0.000000e+00> : vector<1x8xf32>
    %30 = tpu.matmul %29, %28, %cst_17 {dimension_numbers = #tpu.dot_dimension_numbers<[1], [1], [0], [0], [0, 0, 1, 0], [], []>} : vector<1x64xf32>, vector<8x64xf32>, vector<1x8xf32> -> vector<1x8xf32>
    %cst_18 = arith.constant 0.000000e+00 : f32
    %31 = vector.broadcast %cst_18 : f32 to vector<1x8xf32>
    %32 = arith.subf %31, %30 : vector<1x8xf32>
    %33 = math.exp %32 : vector<1x8xf32>
    %cst_19 = arith.constant 1.000000e+00 : f32
    %34 = vector.broadcast %cst_19 : f32 to vector<1x8xf32>
    %35 = arith.addf %34, %33 : vector<1x8xf32>
    %36 = tpu.reciprocal %35 {approx = true} : vector<1x8xf32> -> vector<1x8xf32>
    %c0_20 = arith.constant 0 : index
    %c0_21 = arith.constant 0 : index
    %37 = vector.load %arg7[%c0_20, %c0_21] : memref<1x8xf32, #tpu.memory_space<vmem>>, vector<1x8xf32>
    tpu.vector_store %arg7[%c0_20, %c0_21], %36 {strides = array<i32>} : memref<1x8xf32, #tpu.memory_space<vmem>>, vector<1x8xf32>,
    return
  }
  func.func @transform_0(%arg0: i32) -> (i32, i32) {
    %c0_i32 = arith.constant 0 : i32
    %c0_i32_0 = arith.constant 0 : i32
    %c0_i32_1 = arith.constant 0 : i32
    return %c0_i32, %c0_i32_0 : i32, i32
  }
  func.func @transform_1(%arg0: i32) -> (i32, i32) {
    %c0_i32 = arith.constant 0 : i32
    %c0_i32_0 = arith.constant 0 : i32
    %c0_i32_1 = arith.constant 0 : i32
    return %c0_i32, %c0_i32_0 : i32, i32
  }
  func.func @transform_2(%arg0: i32) -> (i32, i32) {
    %c0_i32 = arith.constant 0 : i32
    %c0_i32_0 = arith.constant 0 : i32
    %c0_i32_1 = arith.constant 0 : i32
    return %c0_i32, %c0_i32_0 : i32, i32
  }
  func.func @transform_3(%arg0: i32) -> (i32, i32) {
    %c0_i32 = arith.constant 0 : i32
    %c0_i32_0 = arith.constant 0 : i32
    %c0_i32_1 = arith.constant 0 : i32
    return %c0_i32, %c0_i32_0 : i32, i32
  }
  func.func @transform_4(%arg0: i32) -> (i32, i32) {
    %c0_i32 = arith.constant 0 : i32
    %c0_i32_0 = arith.constant 0 : i32
    %c0_i32_1 = arith.constant 0 : i32
    return %c0_i32, %c0_i32_0 : i32, i32
  }
  func.func @transform_5(%arg0: i32) -> (i32, i32) {
    %c0_i32 = arith.constant 0 : i32
    %c0_i32_0 = arith.constant 0 : i32
    %c0_i32_1 = arith.constant 0 : i32
    return %c0_i32, %c0_i32_0 : i32, i32
  }
  func.func @transform_6(%arg0: i32) -> (i32, i32) {
    %c0_i32 = arith.constant 0 : i32
    %c0_i32_0 = arith.constant 0 : i32
    %c0_i32_1 = arith.constant 0 : i32
    return %c0_i32, %c0_i32_0 : i32, i32
  }
}

</mosaic_0001>

<bundles_post_ra>
// kernel: tpu_custom_call.1
= control target key start
LH: loop header
LB: loop body
LE: loop exit
PB: predicated region body
PF: predicated region fallthrough
CT: control target
= control target key end

     0   :  { %11 = vsyncpa [#allocation3], 0  ;;  %s448_s0 = inlined_call_operand.hbm [shape: f32[8,32], index: 0, kind: input, shape index: {}]   ;;  %s449_s1 = inlined_call_operand.vmem [shape: f32[1,32], index: 1, kind: input, shape index: {}]   ;;  %s450_s2 = inlined_call_operand.vmem [shape: f32[1,32], index: 2, kind: input, shape index: {}]   ;;  %s451_s3 = inlined_call_operand.hbm [shape: f32[32,64], index: 3, kind: input, shape index: {}]   ;;  %s452_s4 = inlined_call_operand.vmem [shape: f32[1,64], index: 4, kind: input, shape index: {}]   ;;  %s453_s5 = inlined_call_operand.vmem [shape: f32[1,64], index: 5, kind: input, shape index: {}]   ;;  %s454_s6 = inlined_call_operand.hbm [shape: f32[1,8], index: 6, kind: output, shape index: {}]  }
   0x1   :  { %12 = vsyncpa [#allocation6], 0 }
   0x2   :  { %13 = vsyncpa [#allocation4], 0  ;;  %s382_s21 = smov [#allocation2]   ;;  %s383_s23 = smov [#allocation5]  }
   0x3   :  { %s20_s22 = sshll.u32 %s382_s21, 4  ;;  %s33_s24 = sshll.u32 %s383_s23, 4  ;;  %s21_s22 = int_to_ptr.vmem [resolvable:$true] %s20_s22  ;;  %s34_s24 = int_to_ptr.vmem [resolvable:$true] %s33_s24 }
   0x4   :  { %s324_s25 = scalar_lea.vmem %s21_s22, 128  ;;  %p329_p1 = scmp.lt.s32.totalorder %s21_s22, %s21_s22 }
   0x5   :  { %p325_p0 = scmp.ne.s32.totalorder %s21_s22, %s324_s25  ;;  %p330_p2 = scmp.lt.s32.totalorder %s324_s25, %s324_s25 }
   0x7   :  { %p331_p3 = por %p330_p2, %p329_p1 }
   0x9   :  { %p332_p4 = pnand %p331_p3, %p325_p0 }
   0xb   :  { %335 = shalt.err (!%p332_p4)
}
   0xc   :  { %23 = dma.hbm_to_vmem [thread:$0]  %s448_s0, 128, %s21_s22, [#allocation3]  }
   0xd   :  { %s344_s28 = scalar_lea.vmem %s34_s24, 512  ;;  %p349_p6 = scmp.lt.s32.totalorder %s34_s24, %s34_s24 }
   0xe   :  { %p345_p5 = scmp.ne.s32.totalorder %s34_s24, %s344_s28  ;;  %p350_p7 = scmp.lt.s32.totalorder %s344_s28, %s344_s28 }
  0x10   :  { %p351_p8 = por %p350_p7, %p349_p6 }
  0x12   :  { %p352_p9 = pnand %p351_p8, %p345_p5 }
  0x14   :  { %355 = shalt.err (!%p352_p9)
}
  0x15   :  { %s384_s29 = smov 128   ;;  %s385_s30 = smov 8  }
  0x16   :  { %39 = dma.hbm_to_vmem [thread:$0]  %s451_s3, 512, %s34_s24, [#allocation6], %s384_s29, %s384_s29, %s385_s30  }
  0x17   :  { %376 = dma.done.wait [#allocation3], 128  }
  0x18   :  { %377 = vsyncadd [#allocation3], 4294967168 }
  0x19   :  { %378 = dma.done.wait [#allocation6], 512  }
  0x1a   :  { %379 = vsyncadd [#allocation6], 4294966784  ;;  %v386_v0 = vmov 0.0   ;;  %vm387_vm0 = vmmov 0   ;;  %vm51_vm1 = vcmask 261120   ;;  %v92_v1 = vld [vmem:[#allocation5 + $0x18] sm:$0xff]  ;;  %v75_v25 = vlaneseq }
  0x1b   :  { %287 = vmatprep.subr.mxu0 %v386_v0  ;;  %295 = vmatprep.mubr.msk.f32.mxu0 %vm387_vm0, %v386_v0  ;;  %v91_v2 = vld [vmem:[#allocation5 + $0x10] sm:$0xff]  ;;  %v50_v3 = vld [vmem:[#allocation2] sm:$0xff]  ;;  %v90_v4 = vld [vmem:[#allocation5 + $0x8] sm:$0xff]  ;;  %vm175_vm2 = vcmask 523264   ;;  %vm257_vm3 = vcmask 57344  }
  0x1c   :  { %298 = vmatprep.subr.mxu1 %v386_v0  ;;  %300 = vmatprep.mubr.msk.f32.mxu1 %vm387_vm0, %v386_v0  ;;  %v52_v5 = vsel %vm51_vm1, %v50_v3, 0.0  ;;  %v89_v7 = vld [vmem:[#allocation5] sm:$0xff]  ;;  %v76_v26 = vshrl.u32 %v75_v25, 7  ;;  %v70_v27 = vld [vmem:[%s449_s1] sm:$0x1] }
  0x1d   :  { %288 = vmatpush3.msra.mxu0 %v92_v1  ;;  %v53_v6 = vrot.slane %v52_v5, 4  ;;  %v275_v32 = vld [vmem:[%s450_s2] ss:$0 sm:$0xff]  ;;  %s388_s2 = smov [#allocation7]  }
  0x1e   :  { %289 = vmatprep.subr.mxu0 %v386_v0  ;;  %v77_v28 = vsub.s32 0, %v76_v26  ;;  %v276_v35 = vld [vmem:[%s452_s4] ss:$0 sm:$0xff]  ;;  %s265_s4 = sshll.u32 %s388_s2, 4  ;;  %s266_s4 = int_to_ptr.vmem [resolvable:$true] %s265_s4 }
  0x1f   :  { %290 = vmatpush3.msra.mxu0 %v91_v2  ;;  %v54_v8 = vadd.f32 %v53_v6, %v52_v5  ;;  %v174_v40 = vld [vmem:[%s453_s5] sm:$0x1]  ;;  %s356_s14 = scalar_lea.vmem %s266_s4, 16  ;;  %s360_s15 = scalar_lea.vmem %s266_s4, 32 }
  0x20   :  { %291 = vmatprep.subr.mxu0 %v386_v0  ;;  %p357_p10 = scmp.ne.s32.totalorder %s266_s4, %s356_s14  ;;  %p361_p11 = scmp.lt.s32.totalorder %s266_s4, %s266_s4 }
  0x21   :  { %292 = vmatpush3.msra.mxu0 %v90_v4  ;;  %v55_v9 = vrot.slane %v54_v8, 2  ;;  %p362_p12 = scmp.lt.s32.totalorder %s360_s15, %s356_s14 }
  0x22   :  { %293 = vmatprep.subr.mxu0 %v386_v0 }
  0x23   :  { %294 = vmatpush3.msra.mxu0 %v89_v7  ;;  %v56_v10 = vadd.f32 %v55_v9, %v54_v8  ;;  %p363_p13 = por %p362_p12, %p361_p11 }
  0x25   :  { %v57_v11 = vrot.slane %v56_v10, 1  ;;  %p364_p0 = pnand %p363_p13, %p357_p10 }
  0x27   :  { %v58_v12 = vadd.f32 %v57_v11, %v56_v10 }
  0x29   :  { %v59_v13 = vmul.f32 0.125, %v58_v12 }
  0x2b   :  { %v60_v14 = vsub.f32 %v50_v3, %v59_v13 }
  0x2d   :  { %v61_v15 = vmul.f32 %v60_v14, %v60_v14 }
  0x2f   :  { %v62_v16 = vsel %vm51_vm1, %v61_v15, 0.0 }
  0x30   :  { %v63_v17 = vrot.slane %v62_v16, 4 }
  0x32   :  { %v64_v18 = vadd.f32 %v63_v17, %v62_v16 }
  0x34   :  { %v65_v19 = vrot.slane %v64_v18, 2 }
  0x36   :  { %v66_v20 = vadd.f32 %v65_v19, %v64_v18 }
  0x38   :  { %v67_v21 = vrot.slane %v66_v20, 1 }
  0x3a   :  { %v68_v22 = vadd.f32 %v67_v21, %v66_v20 }
  0x3c   :  { %v69_v23 = vmul.f32 0.125, %v68_v22 }
  0x3e   :  { %v71_v24 = vadd.f32 1e-05, %v69_v23 }
  0x40   :  { %310 = vrsqrt.f32 %v71_v24 }
  0x4d   :  { %v311_v29 = vpop.eup %310 }
  0x4e   :  { %v73_v30 = vmul.f32 %v311_v29, %v70_v27 }
  0x50   :  { %v78_v31 = vrot.slane %v73_v30, %v77_v28 }
  0x52   :  { %v80_v33 = vmul.f32 %v78_v31, %v60_v14 }
  0x54   :  { %v88_v34 = vadd.f32 %v275_v32, %v80_v33 }
  0x56   :  { %296 = vmatmul.mubr.msk.f32.vlgmr.msra.gmra.mxu0 %vm51_vm1, %v88_v34 }
 0x116   :  { %v169_v36 = vpop.f32.mrf.mxu0 }
 0x117   :  { %v170_v37 = vadd.f32 %v276_v35, %v169_v36 }
 0x118   :  { %v297_v38 = vpop.f32.mrf.mxu0 }
 0x119   :  { %v173_v39 = vmax.f32 %v170_v37, 0.0 }
 0x11b   :  { %299 = vmatpush3.xpose.msk.msra.mxu1 %vm175_vm2, %v173_v39 }
 0x11e   :  { %301 = vmatmul.mubr.msk.f32.vlgmr.msra.gmra.mxu1 %vm175_vm2, %v174_v40 }
 0x1de   :  { %v248_v41 = vpop.f32.mrf.mxu1 }
 0x1df   :  { %v252_v42 = vsub.f32 0.0, %v248_v41 }
 0x1e0   :  { %v302_v43 = vpop.f32.mrf.mxu1 }
 0x1e1   :  { %v253_v44 = vmul.f32 1.442695, %v252_v42 }
 0x1e3   :  { %312 = vpow2.f32 %v253_v44 }
 0x1f0   :  { %v313_v45 = vpop.eup %312 }
 0x1f1   :  { %v255_v46 = vadd.f32 1.0, %v313_v45 }
 0x1f3   :  { %314 = vrcp.f32 %v255_v46 }
 0x200   :  { %v315_v47 = vpop.eup %314 }
 0x201   :  { %258 = vst.msk [vmem:[#allocation7] sm:$0x1] %vm257_vm3, %v315_v47 }
 0x202   :  { %367 = shalt.err (!%p364_p0)
}
 0x203   :  { %268 = dma.vmem_to_hbm [thread:$0]  %s266_s4, 16, %s454_s6, [#allocation4]  }
 0x204   :  { %380 = dma.done.wait [#allocation4], 16  }
 0x205   :  { %381 = vsyncadd [#allocation4], 4294967280 }
 0x206   :  { %272 = vsyncpa [#allocation3], 1 }
 0x207   :  { %273 = vsyncpa [#allocation6], 1 }
 0x208   :  { %274 = vsyncpa [#allocation4], 1 }

</bundles_post_ra>
